<compile_context>
chip_gen: v5e
topology: v5e:2x2
jax: 0.10.0
libtpu: 0.0.40
codegen_flags: <defaults>
</compile_context>

<pallas_src>
import functools
import math

import numpy as np
import jax
import jax.numpy as jnp
from jax.experimental import pallas as pl
from jax.experimental.pallas import tpu as pltpu

# Module hyper-parameters (defaults of ContinuousConv2D.__init__)
ALPHA = 0.95
ALPHAS = 0.9
TAU_M__DT = 1.0 / (1.0 - ALPHA)     # 20.0
TAU_S__DT = 1.0 / (1.0 - ALPHAS)    # 10.0


# ---------------------------------------------------------------------------
# Fused kernel: LIF trace update + H-halo pad + block-Toeplitz conv GEMM + activations.
# One batch tile (B images) per grid step.
# ---------------------------------------------------------------------------
def _fused_kernel(x_ref, e0_ref, e1_ref, w_ref, b_ref,
                  ne0_ref, ne1_ref, spike_ref, pv_ref, pvmem_ref,
                  e1pad_ref,
                  *, B, H, ph, H_out, KH, Cpad, Nlane):
    # ---------------- LIF synaptic-trace update (VPU, full 128-lane vregs) ----------
    # Lane-padded tail columns are zero on input and stay zero (linear update).
    x = x_ref[...]                                        # (B, H, Cpad)
    eps0 = x * TAU_S__DT + ALPHAS * e0_ref[...]
    eps1 = ALPHA * e1_ref[...] + eps0 * TAU_M__DT
    ne0_ref[...] = eps0
    ne1_ref[...] = eps1

    # ---------------- H-padded eps1 in a small VMEM scratch --------------------------
    # Zero only the halo strips (2*ph rows).  Done every step (cheap) instead of a
    # program_id==0 gate: the "parallel" grid axis may be split across TensorCores and
    # each core has its own scratch, so a one-time gate could leave a core uninitialized.
    if ph > 0:
        e1pad_ref[:, :ph, :] = jnp.zeros((B, ph, Cpad), jnp.float32)
        e1pad_ref[:, ph + H:, :] = jnp.zeros((B, ph, Cpad), jnp.float32)
    e1pad_ref[:, ph:ph + H, :] = eps1

    # ---------------- shifted-row block-Toeplitz GEMM (MXU) ---------------------------
    # acc[b*H_out+ho, wo*Cout+co] = sum_kh  e1pad[b, ho+kh, :] @ W_kh[:, wo*Cout+co]
    # W padding is baked into the Toeplitz zeros of w_ref; only H needed the halo.
    acc = jnp.zeros((B * H_out, Nlane), jnp.float32)
    for kh in range(KH):                                  # KH small & static -> unrolled
        lhs = e1pad_ref[:, kh:kh + H_out, :].reshape(B * H_out, Cpad)
        acc = acc + jnp.dot(lhs, w_ref[kh], preferred_element_type=jnp.float32)
    acc = acc + b_ref[...]                                # bias broadcast (1, Nlane)

    # ---------------- epilogue (128-lane dense stores) --------------------------------
    pvmem_ref[...] = acc
    pv_ref[...] = 0.5 * jnp.tanh(0.5 * acc) + 0.5        # sigmoid via EUP tanh
    spike_ref[...] = (acc > 0.0).astype(jnp.float32)      # spiking=True output_act


def _choose_batch_tile(n, rows_per_image, m_cap=4096, min_tiles=2):
    """Largest divisor bt of n with bt*rows_per_image <= m_cap (GEMM M rows) and
    n // bt >= min(min_tiles, n)  (keep >=2 grid steps so both v7x TensorCores work)."""
    best = 1
    for cand in range(1, n + 1):
        if n % cand:
            continue
        if cand * rows_per_image > m_cap:
            continue
        if n // cand < min(min_tiles, n):
            continue
        best = cand
    return best


# ---------------------------------------------------------------------------
# Wrapper (layout glue: lane-dense reshapes, Toeplitz weight build, block specs)
# ---------------------------------------------------------------------------
def continuous_conv2d_forward(x_nchw, eps0_nchw, eps1_nchw, weight_oihw, bias,
                              *, stride=1, padding=(2, 2), dilation=1, groups=1):
    assert stride == 1 and dilation == 1 and groups == 1, \
        "kernel implements the module defaults (stride=1, dilation=1, groups=1)"
    N, Cin, H, W = x_nchw.shape
    Cout, _, KH, KW = weight_oihw.shape
    ph, pw = padding
    H_out = H + 2 * ph - KH + 1
    W_out = W + 2 * pw - KW + 1
    Hp = H + 2 * ph

    WC = W * Cin                                   # state lane width (w-major, ci-minor)
    Cpad = max(128, ((WC + 127) // 128) * 128)     # pad contraction/lane dim to 128
    Nlane = W_out * Cout                           # conv-output lane width (wo, co)

    # --- lane-dense state layout: NCHW -> (N, H, W*Cin) -> zero-pad lanes to Cpad ---
    def to_lane(t):
        t = jnp.transpose(t, (0, 2, 3, 1)).astype(jnp.float32).reshape(N, H, WC)
        return jnp.pad(t, ((0, 0), (0, 0), (0, Cpad - WC)))
    x = to_lane(x_nchw)
    e0 = to_lane(eps0_nchw)
    e1 = to_lane(eps1_nchw)

    # --- block-Toeplitz weight stack (KH, Cpad, W_out*Cout), built exactly via gather ---
    # W_stack[kh, w*Cin+ci, wo*Cout+co] = weight[co, ci, kh, w-wo+pw] if 0<=w-wo+pw<KW else 0
    wk = jnp.transpose(weight_oihw, (2, 3, 1, 0)).astype(jnp.float32)   # (KH, KW, Cin, Cout)
    wk = jnp.concatenate([wk, jnp.zeros((KH, 1, Cin, Cout), jnp.float32)], axis=1)
    kw_map = np.arange(W)[:, None] - np.arange(W_out)[None, :] + pw      # (W, W_out)
    kw_map = np.where((kw_map >= 0) & (kw_map < KW), kw_map, KW).astype(np.int32)
    w_full = wk[:, kw_map]                                 # (KH, W, W_out, Cin, Cout)
    w_stack = jnp.transpose(w_full, (0, 1, 3, 2, 4)).reshape(KH, WC, Nlane)
    w_stack = jnp.pad(w_stack, ((0, 0), (0, Cpad - WC), (0, 0)))
    b_row = jnp.tile(bias.astype(jnp.float32), W_out).reshape(1, Nlane)

    B_tile = _choose_batch_tile(N, H_out)
    n_tiles = N // B_tile

    kernel = functools.partial(_fused_kernel, B=B_tile, H=H, ph=ph,
                               H_out=H_out, KH=KH, Cpad=Cpad, Nlane=Nlane)

    state_sd = jax.ShapeDtypeStruct((N, H, Cpad), jnp.float32)
    conv_sd = jax.ShapeDtypeStruct((N * H_out, Nlane), jnp.float32)
    state_spec = pl.BlockSpec((B_tile, H, Cpad), lambda b: (b, 0, 0))
    conv_spec = pl.BlockSpec((B_tile * H_out, Nlane), lambda b: (b, 0))

    new_e0, new_e1, spike2d, pv2d, pvmem2d = pl.pallas_call(
        kernel,
        grid=(n_tiles,),
        in_specs=[
            state_spec,                                        # x
            state_spec,                                        # eps0 (prev state)
            state_spec,                                        # eps1 (prev state)
            pl.BlockSpec((KH, Cpad, Nlane), lambda b: (0, 0, 0)),  # Toeplitz weight (resident)
            pl.BlockSpec((1, Nlane), lambda b: (0, 0)),            # bias row
        ],
        out_specs=(state_spec, state_spec, conv_spec, conv_spec, conv_spec),
        out_shape=(state_sd, state_sd, conv_sd, conv_sd, conv_sd),
        scratch_shapes=[pltpu.VMEM((B_tile, Hp, Cpad), jnp.float32)],   # H-padded eps1
        input_output_aliases={1: 0, 2: 1},                 # eps0/eps1 updated in place
        compiler_params=pltpu.CompilerParams(
            dimension_semantics=("parallel",),
            vmem_limit_bytes=32 * 1024 * 1024),            # safe on v5e/v6e/v7x (64 MiB)
    )(x, e0, e1, w_stack, b_row)

    # --- back to PyTorch NCHW layouts (XLA glue) ---
    def state_to_nchw(t):
        return jnp.transpose(t[:, :, :WC].reshape(N, H, W, Cin), (0, 3, 1, 2))

    def conv_to_nchw(t):
        return jnp.transpose(t.reshape(N, H_out, W_out, Cout), (0, 3, 1, 2))

    return (conv_to_nchw(spike2d), conv_to_nchw(pv2d), conv_to_nchw(pvmem2d),
            state_to_nchw(new_e0), state_to_nchw(new_e1))


if __name__ == "__main__":
    # Small shapes consistent with the module.
    N, Cin, Cout, H, W, Ksz, PAD = 2, 4, 8, 16, 16, 5, 2

    key = jax.random.PRNGKey(0)
    kx, ke0, ke1, kw_, kb = jax.random.split(key, 5)

    # Deterministic parameter init mirroring reset_parameters():
    n = Cin * Ksz * Ksz
    stdv = 1.0 / math.sqrt(n) / 250.0
    weight = jax.random.uniform(kw_, (Cout, Cin, Ksz, Ksz), jnp.float32,
                                minval=-stdv * 0.01, maxval=stdv * 0.01)
    bias = jax.random.uniform(kb, (Cout,), jnp.float32, minval=-stdv, maxval=stdv)

    # Inputs + previous NeuronState (NCHW like PyTorch).
    x = jax.random.normal(kx, (N, Cin, H, W), jnp.float32)
    eps0_state = 0.1 * jax.random.normal(ke0, (N, Cin, H, W), jnp.float32)
    eps1_state = 0.1 * jax.random.normal(ke1, (N, Cin, H, W), jnp.float32)

    fwd = jax.jit(functools.partial(continuous_conv2d_forward, padding=(PAD, PAD)))
    spike, pv, pvmem, new_eps0, new_eps1 = jax.block_until_ready(
        fwd(x, eps0_state, eps1_state, weight, bias))

    # Pure-JAX reference (HIGHEST precision so the reference conv is true f32).
    ref_eps0 = x * TAU_S__DT + ALPHAS * eps0_state
    ref_eps1 = ALPHA * eps1_state + ref_eps0 * TAU_M__DT
    ref_pvmem = jax.lax.conv_general_dilated(
        ref_eps1, weight, window_strides=(1, 1),
        padding=((PAD, PAD), (PAD, PAD)),
        dimension_numbers=("NCHW", "OIHW", "NCHW"),
        precision=jax.lax.Precision.HIGHEST) + bias[None, :, None, None]
    ref_pv = jax.nn.sigmoid(ref_pvmem)
    ref_spike = (ref_pvmem > 0).astype(jnp.float32)

    assert new_eps0.shape == (N, Cin, H, W) and new_eps1.shape == (N, Cin, H, W)
    assert pvmem.shape == (N, Cout, H, W) and pv.shape == (N, Cout, H, W)
    assert jnp.allclose(new_eps0, ref_eps0, rtol=1e-5, atol=1e-5)
    assert jnp.allclose(new_eps1, ref_eps1, rtol=1e-5, atol=1e-5)
    assert jnp.allclose(pvmem, ref_pvmem, rtol=1e-4, atol=1e-6)
    assert jnp.allclose(pv, ref_pv, rtol=1e-4, atol=1e-6)
    # Spike check away from the (pvmem ~ 0) decision boundary (fp summation order).
    safe = jnp.abs(ref_pvmem) > 1e-6
    assert jnp.array_equal(jnp.where(safe, spike, 0.0), jnp.where(safe, ref_spike, 0.0))

    print("KERNEL_OK")
</pallas_src>

<mosaic_0001>
module attributes {stable_mosaic.version = 11 : i64} {
  func.func @_fused_kernel(%arg0: i32, %arg1: memref<1x16x128xf32, #tpu.memory_space<vmem>>, %arg2: memref<1x16x128xf32, #tpu.memory_space<vmem>>, %arg3: memref<1x16x128xf32, #tpu.memory_space<vmem>>, %arg4: memref<5x128x128xf32, #tpu.memory_space<vmem>>, %arg5: memref<1x128xf32, #tpu.memory_space<vmem>>, %arg6: memref<1x16x128xf32, #tpu.memory_space<vmem>>, %arg7: memref<1x16x128xf32, #tpu.memory_space<vmem>>, %arg8: memref<16x128xf32, #tpu.memory_space<vmem>>, %arg9: memref<16x128xf32, #tpu.memory_space<vmem>>, %arg10: memref<16x128xf32, #tpu.memory_space<vmem>>, %arg11: memref<1x20x128xf32, #tpu.memory_space<vmem>>) attributes {dimension_semantics = [#tpu.dimension_semantics<parallel>], iteration_bounds = array<i64: 2>, scalar_prefetch = 0 : i64, scratch_operands = 1 : i64, tpu.core_type = #tpu.core_type<tc>, window_params = [{transform_indices = @transform_0, window_bounds = array<i64: 1, 16, 128>}, {transform_indices = @transform_1, window_bounds = array<i64: 1, 16, 128>}, {transform_indices = @transform_2, window_bounds = array<i64: 1, 16, 128>}, {pipeline_mode = #tpu.pipeline_mode<synchronous>, transform_indices = @transform_3, window_bounds = array<i64: 5, 128, 128>}, {pipeline_mode = #tpu.pipeline_mode<synchronous>, transform_indices = @transform_4, window_bounds = array<i64: 1, 128>}, {transform_indices = @transform_5, window_bounds = array<i64: 1, 16, 128>}, {transform_indices = @transform_6, window_bounds = array<i64: 1, 16, 128>}, {transform_indices = @transform_7, window_bounds = array<i64: 16, 128>}, {transform_indices = @transform_8, window_bounds = array<i64: 16, 128>}, {transform_indices = @transform_9, window_bounds = array<i64: 16, 128>}]} {
    %c0 = arith.constant 0 : index
    %c0_0 = arith.constant 0 : index
    %c0_1 = arith.constant 0 : index
    %0 = vector.load %arg1[%c0, %c0_0, %c0_1] : memref<1x16x128xf32, #tpu.memory_space<vmem>>, vector<1x16x128xf32>
    %cst = arith.constant 1.000000e+01 : f32
    %1 = vector.broadcast %cst : f32 to vector<1x16x128xf32>
    %2 = arith.mulf %0, %1 : vector<1x16x128xf32>
    %c0_2 = arith.constant 0 : index
    %c0_3 = arith.constant 0 : index
    %c0_4 = arith.constant 0 : index
    %3 = vector.load %arg2[%c0_2, %c0_3, %c0_4] : memref<1x16x128xf32, #tpu.memory_space<vmem>>, vector<1x16x128xf32>
    %cst_5 = arith.constant 0.899999976 : f32
    %4 = vector.broadcast %cst_5 : f32 to vector<1x16x128xf32>
    %5 = arith.mulf %4, %3 : vector<1x16x128xf32>
    %6 = arith.addf %2, %5 : vector<1x16x128xf32>
    %c0_6 = arith.constant 0 : index
    %c0_7 = arith.constant 0 : index
    %c0_8 = arith.constant 0 : index
    %7 = vector.load %arg3[%c0_6, %c0_7, %c0_8] : memref<1x16x128xf32, #tpu.memory_space<vmem>>, vector<1x16x128xf32>
    %cst_9 = arith.constant 0.949999988 : f32
    %8 = vector.broadcast %cst_9 : f32 to vector<1x16x128xf32>
    %9 = arith.mulf %8, %7 : vector<1x16x128xf32>
    %cst_10 = arith.constant 2.000000e+01 : f32
    %10 = vector.broadcast %cst_10 : f32 to vector<1x16x128xf32>
    %11 = arith.mulf %6, %10 : vector<1x16x128xf32>
    %12 = arith.addf %9, %11 : vector<1x16x128xf32>
    %c0_11 = arith.constant 0 : index
    %c0_12 = arith.constant 0 : index
    %c0_13 = arith.constant 0 : index
    %13 = vector.load %arg6[%c0_11, %c0_12, %c0_13] : memref<1x16x128xf32, #tpu.memory_space<vmem>>, vector<1x16x128xf32>
    tpu.vector_store %arg6[%c0_11, %c0_12, %c0_13], %6 {strides = array<i32>} : memref<1x16x128xf32, #tpu.memory_space<vmem>>, vector<1x16x128xf32>,
    %c0_14 = arith.constant 0 : index
    %c0_15 = arith.constant 0 : index
    %c0_16 = arith.constant 0 : index
    %14 = vector.load %arg7[%c0_14, %c0_15, %c0_16] : memref<1x16x128xf32, #tpu.memory_space<vmem>>, vector<1x16x128xf32>
    tpu.vector_store %arg7[%c0_14, %c0_15, %c0_16], %12 {strides = array<i32>} : memref<1x16x128xf32, #tpu.memory_space<vmem>>, vector<1x16x128xf32>,
    %cst_17 = arith.constant 0.000000e+00 : f32
    %15 = vector.broadcast %cst_17 : f32 to vector<1x2x128xf32>
    %c0_18 = arith.constant 0 : index
    %c0_19 = arith.constant 0 : index
    %c0_20 = arith.constant 0 : index
    %16 = vector.load %arg11[%c0_18, %c0_19, %c0_20] : memref<1x20x128xf32, #tpu.memory_space<vmem>>, vector<1x2x128xf32>
    tpu.vector_store %arg11[%c0_18, %c0_19, %c0_20], %15 {strides = array<i32>} : memref<1x20x128xf32, #tpu.memory_space<vmem>>, vector<1x2x128xf32>,
    %cst_21 = arith.constant 0.000000e+00 : f32
    %17 = vector.broadcast %cst_21 : f32 to vector<1x2x128xf32>
    %c0_22 = arith.constant 0 : index
    %c18 = arith.constant 18 : index
    %c0_23 = arith.constant 0 : index
    %18 = vector.load %arg11[%c0_22, %c18, %c0_23] : memref<1x20x128xf32, #tpu.memory_space<vmem>>, vector<1x2x128xf32>
    tpu.vector_store %arg11[%c0_22, %c18, %c0_23], %17 {strides = array<i32>} : memref<1x20x128xf32, #tpu.memory_space<vmem>>, vector<1x2x128xf32>,
    %c0_24 = arith.constant 0 : index
    %c2 = arith.constant 2 : index
    %c0_25 = arith.constant 0 : index
    %19 = vector.load %arg11[%c0_24, %c2, %c0_25] : memref<1x20x128xf32, #tpu.memory_space<vmem>>, vector<1x16x128xf32>
    tpu.vector_store %arg11[%c0_24, %c2, %c0_25], %12 {strides = array<i32>} : memref<1x20x128xf32, #tpu.memory_space<vmem>>, vector<1x16x128xf32>,
    %cst_26 = arith.constant 0.000000e+00 : f32
    %20 = vector.broadcast %cst_26 : f32 to vector<16x128xf32>
    %c0_27 = arith.constant 0 : index
    %c0_28 = arith.constant 0 : index
    %c0_29 = arith.constant 0 : index
    %21 = vector.load %arg11[%c0_27, %c0_28, %c0_29] : memref<1x20x128xf32, #tpu.memory_space<vmem>>, vector<1x16x128xf32>
    %22 = vector.shape_cast %21 : vector<1x16x128xf32> to vector<16x128xf32>
    %c0_30 = arith.constant 0 : index
    %c0_31 = arith.constant 0 : index
    %c0_32 = arith.constant 0 : index
    %23 = vector.load %arg4[%c0_30, %c0_31, %c0_32] : memref<5x128x128xf32, #tpu.memory_space<vmem>>, vector<1x128x128xf32>
    %24 = vector.shape_cast %23 : vector<1x128x128xf32> to vector<128x128xf32>
    %cst_33 = arith.constant dense<0.000000e+00> : vector<16x128xf32>
    %25 = tpu.matmul %22, %24, %cst_33 {dimension_numbers = #tpu.dot_dimension_numbers<[1], [0], [0], [1], [0, 0, 1, 1], [], []>} : vector<16x128xf32>, vector<128x128xf32>, vector<16x128xf32> -> vector<16x128xf32>
    %26 = arith.addf %20, %25 : vector<16x128xf32>
    %c0_34 = arith.constant 0 : index
    %c1 = arith.constant 1 : index
    %c0_35 = arith.constant 0 : index
    %27 = vector.load %arg11[%c0_34, %c1, %c0_35] : memref<1x20x128xf32, #tpu.memory_space<vmem>>, vector<1x16x128xf32>
    %28 = vector.shape_cast %27 : vector<1x16x128xf32> to vector<16x128xf32>
    %c1_36 = arith.constant 1 : index
    %c0_37 = arith.constant 0 : index
    %c0_38 = arith.constant 0 : index
    %29 = vector.load %arg4[%c1_36, %c0_37, %c0_38] : memref<5x128x128xf32, #tpu.memory_space<vmem>>, vector<1x128x128xf32>
    %30 = vector.shape_cast %29 : vector<1x128x128xf32> to vector<128x128xf32>
    %cst_39 = arith.constant dense<0.000000e+00> : vector<16x128xf32>
    %31 = tpu.matmul %28, %30, %cst_39 {dimension_numbers = #tpu.dot_dimension_numbers<[1], [0], [0], [1], [0, 0, 1, 1], [], []>} : vector<16x128xf32>, vector<128x128xf32>, vector<16x128xf32> -> vector<16x128xf32>
    %32 = arith.addf %26, %31 : vector<16x128xf32>
    %c0_40 = arith.constant 0 : index
    %c2_41 = arith.constant 2 : index
    %c0_42 = arith.constant 0 : index
    %33 = vector.load %arg11[%c0_40, %c2_41, %c0_42] : memref<1x20x128xf32, #tpu.memory_space<vmem>>, vector<1x16x128xf32>
    %34 = vector.shape_cast %33 : vector<1x16x128xf32> to vector<16x128xf32>
    %c2_43 = arith.constant 2 : index
    %c0_44 = arith.constant 0 : index
    %c0_45 = arith.constant 0 : index
    %35 = vector.load %arg4[%c2_43, %c0_44, %c0_45] : memref<5x128x128xf32, #tpu.memory_space<vmem>>, vector<1x128x128xf32>
    %36 = vector.shape_cast %35 : vector<1x128x128xf32> to vector<128x128xf32>
    %cst_46 = arith.constant dense<0.000000e+00> : vector<16x128xf32>
    %37 = tpu.matmul %34, %36, %cst_46 {dimension_numbers = #tpu.dot_dimension_numbers<[1], [0], [0], [1], [0, 0, 1, 1], [], []>} : vector<16x128xf32>, vector<128x128xf32>, vector<16x128xf32> -> vector<16x128xf32>
    %38 = arith.addf %32, %37 : vector<16x128xf32>
    %c0_47 = arith.constant 0 : index
    %c3 = arith.constant 3 : index
    %c0_48 = arith.constant 0 : index
    %39 = vector.load %arg11[%c0_47, %c3, %c0_48] : memref<1x20x128xf32, #tpu.memory_space<vmem>>, vector<1x16x128xf32>
    %40 = vector.shape_cast %39 : vector<1x16x128xf32> to vector<16x128xf32>
    %c3_49 = arith.constant 3 : index
    %c0_50 = arith.constant 0 : index
    %c0_51 = arith.constant 0 : index
    %41 = vector.load %arg4[%c3_49, %c0_50, %c0_51] : memref<5x128x128xf32, #tpu.memory_space<vmem>>, vector<1x128x128xf32>
    %42 = vector.shape_cast %41 : vector<1x128x128xf32> to vector<128x128xf32>
    %cst_52 = arith.constant dense<0.000000e+00> : vector<16x128xf32>
    %43 = tpu.matmul %40, %42, %cst_52 {dimension_numbers = #tpu.dot_dimension_numbers<[1], [0], [0], [1], [0, 0, 1, 1], [], []>} : vector<16x128xf32>, vector<128x128xf32>, vector<16x128xf32> -> vector<16x128xf32>
    %44 = arith.addf %38, %43 : vector<16x128xf32>
    %c0_53 = arith.constant 0 : index
    %c4 = arith.constant 4 : index
    %c0_54 = arith.constant 0 : index
    %45 = vector.load %arg11[%c0_53, %c4, %c0_54] : memref<1x20x128xf32, #tpu.memory_space<vmem>>, vector<1x16x128xf32>
    %46 = vector.shape_cast %45 : vector<1x16x128xf32> to vector<16x128xf32>
    %c4_55 = arith.constant 4 : index
    %c0_56 = arith.constant 0 : index
    %c0_57 = arith.constant 0 : index
    %47 = vector.load %arg4[%c4_55, %c0_56, %c0_57] : memref<5x128x128xf32, #tpu.memory_space<vmem>>, vector<1x128x128xf32>
    %48 = vector.shape_cast %47 : vector<1x128x128xf32> to vector<128x128xf32>
    %cst_58 = arith.constant dense<0.000000e+00> : vector<16x128xf32>
    %49 = tpu.matmul %46, %48, %cst_58 {dimension_numbers = #tpu.dot_dimension_numbers<[1], [0], [0], [1], [0, 0, 1, 1], [], []>} : vector<16x128xf32>, vector<128x128xf32>, vector<16x128xf32> -> vector<16x128xf32>
    %50 = arith.addf %44, %49 : vector<16x128xf32>
    %c0_59 = arith.constant 0 : index
    %c0_60 = arith.constant 0 : index
    %51 = vector.load %arg5[%c0_59, %c0_60] : memref<1x128xf32, #tpu.memory_space<vmem>>, vector<1x128xf32>
    %52 = vector.broadcast %51 : vector<1x128xf32> to vector<16x128xf32>
    %53 = arith.addf %50, %52 : vector<16x128xf32>
    %c0_61 = arith.constant 0 : index
    %c0_62 = arith.constant 0 : index
    %54 = vector.load %arg10[%c0_61, %c0_62] : memref<16x128xf32, #tpu.memory_space<vmem>>, vector<16x128xf32>
    tpu.vector_store %arg10[%c0_61, %c0_62], %53 {strides = array<i32>} : memref<16x128xf32, #tpu.memory_space<vmem>>, vector<16x128xf32>,
    %cst_63 = arith.constant 5.000000e-01 : f32
    %55 = vector.broadcast %cst_63 : f32 to vector<16x128xf32>
    %56 = arith.mulf %55, %53 : vector<16x128xf32>
    %57 = math.tanh %56 : vector<16x128xf32>
    %cst_64 = arith.constant 5.000000e-01 : f32
    %58 = vector.broadcast %cst_64 : f32 to vector<16x128xf32>
    %59 = arith.mulf %58, %57 : vector<16x128xf32>
    %cst_65 = arith.constant 5.000000e-01 : f32
    %60 = vector.broadcast %cst_65 : f32 to vector<16x128xf32>
    %61 = arith.addf %59, %60 : vector<16x128xf32>
    %c0_66 = arith.constant 0 : index
    %c0_67 = arith.constant 0 : index
    %62 = vector.load %arg9[%c0_66, %c0_67] : memref<16x128xf32, #tpu.memory_space<vmem>>, vector<16x128xf32>
    tpu.vector_store %arg9[%c0_66, %c0_67], %61 {strides = array<i32>} : memref<16x128xf32, #tpu.memory_space<vmem>>, vector<16x128xf32>,
    %cst_68 = arith.constant 0.000000e+00 : f32
    %63 = vector.broadcast %cst_68 : f32 to vector<16x128xf32>
    %64 = arith.cmpf ogt, %53, %63 : vector<16x128xf32>
    %65 = arith.extui %64 : vector<16x128xi1> to vector<16x128xi32>
    %66 = arith.sitofp %65 : vector<16x128xi32> to vector<16x128xf32>
    %c0_69 = arith.constant 0 : index
    %c0_70 = arith.constant 0 : index
    %67 = vector.load %arg8[%c0_69, %c0_70] : memref<16x128xf32, #tpu.memory_space<vmem>>, vector<16x128xf32>
    tpu.vector_store %arg8[%c0_69, %c0_70], %66 {strides = array<i32>} : memref<16x128xf32, #tpu.memory_space<vmem>>, vector<16x128xf32>,
    return
  }
  func.func @transform_0(%arg0: i32) -> (i32, i32, i32) {
    %c0_i32 = arith.constant 0 : i32
    %c0_i32_0 = arith.constant 0 : i32
    %c0_i32_1 = arith.constant 0 : i32
    return %arg0, %c0_i32, %c0_i32_0 : i32, i32, i32
  }
  func.func @transform_1(%arg0: i32) -> (i32, i32, i32) {
    %c0_i32 = arith.constant 0 : i32
    %c0_i32_0 = arith.constant 0 : i32
    %c0_i32_1 = arith.constant 0 : i32
    return %arg0, %c0_i32, %c0_i32_0 : i32, i32, i32
  }
  func.func @transform_2(%arg0: i32) -> (i32, i32, i32) {
    %c0_i32 = arith.constant 0 : i32
    %c0_i32_0 = arith.constant 0 : i32
    %c0_i32_1 = arith.constant 0 : i32
    return %arg0, %c0_i32, %c0_i32_0 : i32, i32, i32
  }
  func.func @transform_3(%arg0: i32) -> (i32, i32, i32) {
    %c0_i32 = arith.constant 0 : i32
    %c0_i32_0 = arith.constant 0 : i32
    %c0_i32_1 = arith.constant 0 : i32
    %c0_i32_2 = arith.constant 0 : i32
    return %c0_i32, %c0_i32_0, %c0_i32_1 : i32, i32, i32
  }
  func.func @transform_4(%arg0: i32) -> (i32, i32) {
    %c0_i32 = arith.constant 0 : i32
    %c0_i32_0 = arith.constant 0 : i32
    %c0_i32_1 = arith.constant 0 : i32
    return %c0_i32, %c0_i32_0 : i32, i32
  }
  func.func @transform_5(%arg0: i32) -> (i32, i32, i32) {
    %c0_i32 = arith.constant 0 : i32
    %c0_i32_0 = arith.constant 0 : i32
    %c0_i32_1 = arith.constant 0 : i32
    return %arg0, %c0_i32, %c0_i32_0 : i32, i32, i32
  }
  func.func @transform_6(%arg0: i32) -> (i32, i32, i32) {
    %c0_i32 = arith.constant 0 : i32
    %c0_i32_0 = arith.constant 0 : i32
    %c0_i32_1 = arith.constant 0 : i32
    return %arg0, %c0_i32, %c0_i32_0 : i32, i32, i32
  }
  func.func @transform_7(%arg0: i32) -> (i32, i32) {
    %c0_i32 = arith.constant 0 : i32
    %c0_i32_0 = arith.constant 0 : i32
    return %arg0, %c0_i32 : i32, i32
  }
  func.func @transform_8(%arg0: i32) -> (i32, i32) {
    %c0_i32 = arith.constant 0 : i32
    %c0_i32_0 = arith.constant 0 : i32
    return %arg0, %c0_i32 : i32, i32
  }
  func.func @transform_9(%arg0: i32) -> (i32, i32) {
    %c0_i32 = arith.constant 0 : i32
    %c0_i32_0 = arith.constant 0 : i32
    return %arg0, %c0_i32 : i32, i32
  }
}

</mosaic_0001>

<bundles_post_ra>
// kernel: tile.8
= control target key start
LH: loop header
LB: loop body
LE: loop exit
PB: predicated region body
PF: predicated region fallthrough
CT: control target
= control target key end

     0   :  { %s28_s0 = inlined_call_operand.vmem [shape: f32[8], index: 0, kind: input, shape index: {}]   ;;  %s29_s1 = inlined_call_operand.vmem [shape: f32[16,8], index: 1, kind: output, shape index: {}]  }
   0x1   :  { %v4_v0 = vld [vmem:[%s28_s0] ss:$0 sm:$0xff] }
   0x2   :  { %5 = vst [vmem:[%s29_s1] sm:$0xff] %v4_v0 }
   0x3   :  { %8 = vst [vmem:[%s29_s1 + $0x8] sm:$0xff] %v4_v0 }

// kernel: tile.9
= control target key start
LH: loop header
LB: loop body
LE: loop exit
PB: predicated region body
PF: predicated region fallthrough
CT: control target
= control target key end

     0   :  { %s131_s10 = smov 120   ;;  %s132_s11 = smov 104   ;;  %vm3_vm0 = vcmask 64512   ;;  %vm9_vm1 = vcmask 1048512   ;;  %vm15_vm2 = vcmask 982912   ;;  %vm21_vm3 = vcmask 917312   ;;  %s207_s0 = inlined_call_operand.vmem [shape: f32[16,8], index: 0, kind: input, shape index: {}]   ;;  %s208_s1 = inlined_call_operand.vmem [shape: f32[1,128], index: 1, kind: output, shape index: {}]  }
   0x1   :  { %v101_v0 = vld [vmem:[%s207_s0 + $0xf] sm:$0x1]   ;;  %v103_v1 = vld [vmem:[%s207_s0 + $0xd] sm:$0x1]   ;;  %v105_v2 = vld [vmem:[%s207_s0 + $0xb] sm:$0x1]  }
   0x2   :  { %7 = vrot.lane.b32.xlu0 %v101_v0, %s131_s10  ;;  %19 = vrot.lane.b32.xlu1 %v103_v1, %s132_s11  ;;  %s133_s14 = smov 88   ;;  %v102_v3 = vld [vmem:[%s207_s0 + $0xe] sm:$0x1]   ;;  %v104_v4 = vld [vmem:[%s207_s0 + $0xc] sm:$0x1]   ;;  %s134_s19 = smov 112  }
   0x3   :  { %31 = vrot.lane.b32.xlu2 %v105_v2, %s133_s14  ;;  %s135_s20 = smov 96   ;;  %v106_v5 = vld [vmem:[%s207_s0 + $0xa] sm:$0x1]   ;;  %s136_s23 = smov 80   ;;  %v107_v6 = vld [vmem:[%s207_s0 + $0x9] sm:$0x1]  }
   0x4   :  { %v108_v7 = vld [vmem:[%s207_s0 + $0x8] sm:$0x1]   ;;  %s137_s28 = smov 72   ;;  %s138_s29 = smov 64   ;;  %v109_v8 = vld [vmem:[%s207_s0 + $0x7] sm:$0x1]  }
   0x5   :  { %s139_s3 = smov 56   ;;  %v110_v9 = vld [vmem:[%s207_s0 + $0x6] sm:$0x1]   ;;  %v111_v10 = vld [vmem:[%s207_s0 + $0x5] sm:$0x1]   ;;  %s140_s8 = smov 48  }
   0x6   :  { %s141_s9 = smov 40   ;;  %v112_v11 = vld [vmem:[%s207_s0 + $0x4] sm:$0x1]   ;;  %s142_s12 = smov 32   ;;  %v113_v12 = vld [vmem:[%s207_s0 + $0x3] sm:$0x1]  }
   0x7   :  { %v114_v13 = vld [vmem:[%s207_s0 + $0x2] sm:$0x1]   ;;  %s143_s17 = smov 24   ;;  %s144_s18 = smov 16   ;;  %v115_v14 = vld [vmem:[%s207_s0 + $0x1] sm:$0x1]  }
   0x8   :  { %s145_s21 = smov 8   ;;  %v2_v15 = vld [vmem:[%s207_s0] sm:$0x1]   ;;  %vm27_vm4 = vcmask 851712   ;;  %vm33_vm5 = vcmask 786112   ;;  %vm39_vm6 = vcmask 720512  }
   0x9   :  { %4 = vst.msk [vmem:[#allocation0] sm:$0x1] %vm3_vm0, %v2_v15   ;;  %vm45_vm7 = vcmask 654912   ;;  %vm51_vm8 = vcmask 589312   ;;  %vm57_vm9 = vcmask 523712   ;;  %vm63_vm10 = vcmask 458112  }
   0xa   :  { %13 = vrot.lane.b32.xlu0 %v102_v3, %s134_s19  ;;  %25 = vrot.lane.b32.xlu1 %v104_v4, %s135_s20  ;;  %vm69_vm11 = vcmask 392512   ;;  %vm75_vm12 = vcmask 326912   ;;  %vm81_vm13 = vcmask 261312   ;;  %vm87_vm14 = vcmask 195712  }
   0xb   :  { %37 = vrot.lane.b32.xlu2 %v106_v5, %s136_s23  ;;  %vm93_vm15 = vcmask 130112  }
  0x12   :  { %43 = vrot.lane.b32.xlu0 %v107_v6, %s137_s28  ;;  %49 = vrot.lane.b32.xlu1 %v108_v7, %s138_s29 }
  0x13   :  { %55 = vrot.lane.b32.xlu2 %v109_v8, %s139_s3 }
  0x1a   :  { %61 = vrot.lane.b32.xlu0 %v110_v9, %s140_s8  ;;  %67 = vrot.lane.b32.xlu1 %v111_v10, %s141_s9 }
  0x1b   :  { %73 = vrot.lane.b32.xlu2 %v112_v11, %s142_s12 }
  0x22   :  { %79 = vrot.lane.b32.xlu0 %v113_v12, %s143_s17  ;;  %85 = vrot.lane.b32.xlu1 %v114_v13, %s144_s18 }
  0x23   :  { %91 = vrot.lane.b32.xlu2 %v115_v14, %s145_s21 }
  0x5d   :  { %v32_v16 = vpop.permute.xlu2 %31  }
  0x65   :  { %v38_v17 = vpop.permute.xlu2 %37  }
  0x6d   :  { %v56_v18 = vpop.permute.xlu2 %55  }
  0x74   :  { %v8_v19 = vpop.permute.xlu0 %7   ;;  %v20_v20 = vpop.permute.xlu1 %19  }
  0x75   :  { %10 = vst.msk [vmem:[#allocation0] sm:$0x1] %vm9_vm1, %v8_v19   ;;  %v74_v21 = vpop.permute.xlu2 %73  }
  0x7c   :  { %v14_v22 = vpop.permute.xlu0 %13   ;;  %v26_v23 = vpop.permute.xlu1 %25  }
  0x7d   :  { %16 = vst.msk [vmem:[#allocation0] sm:$0x1] %vm15_vm2, %v14_v22   ;;  %v92_v24 = vpop.permute.xlu2 %91  }
  0x7e   :  { %22 = vst.msk [vmem:[#allocation0] sm:$0x1] %vm21_vm3, %v20_v20  }
  0x7f   :  { %28 = vst.msk [vmem:[#allocation0] sm:$0x1] %vm27_vm4, %v26_v23  }
  0x80   :  { %34 = vst.msk [vmem:[#allocation0] sm:$0x1] %vm33_vm5, %v32_v16  }
  0x81   :  { %40 = vst.msk [vmem:[#allocation0] sm:$0x1] %vm39_vm6, %v38_v17  }
  0x84   :  { %v44_v25 = vpop.permute.xlu0 %43   ;;  %v50_v26 = vpop.permute.xlu1 %49  }
  0x85   :  { %46 = vst.msk [vmem:[#allocation0] sm:$0x1] %vm45_vm7, %v44_v25  }
  0x86   :  { %52 = vst.msk [vmem:[#allocation0] sm:$0x1] %vm51_vm8, %v50_v26  }
  0x87   :  { %58 = vst.msk [vmem:[#allocation0] sm:$0x1] %vm57_vm9, %v56_v18  }
  0x8c   :  { %v62_v27 = vpop.permute.xlu0 %61   ;;  %v68_v28 = vpop.permute.xlu1 %67  }
  0x8d   :  { %64 = vst.msk [vmem:[#allocation0] sm:$0x1] %vm63_vm10, %v62_v27  }
  0x8e   :  { %70 = vst.msk [vmem:[#allocation0] sm:$0x1] %vm69_vm11, %v68_v28  }
  0x8f   :  { %76 = vst.msk [vmem:[#allocation0] sm:$0x1] %vm75_vm12, %v74_v21  }
  0x94   :  { %v80_v29 = vpop.permute.xlu0 %79   ;;  %v86_v30 = vpop.permute.xlu1 %85  }
  0x95   :  { %82 = vst.msk [vmem:[#allocation0] sm:$0x1] %vm81_vm13, %v80_v29  }
  0x96   :  { %88 = vst.msk [vmem:[#allocation0] sm:$0x1] %vm87_vm14, %v86_v30  }
  0x97   :  { %94 = vst.msk [vmem:[#allocation0] sm:$0x1] %vm93_vm15, %v92_v24  }
  0x9e   :  { %v97_v31 = vld [vmem:[#allocation0] sm:$0x1] }
  0x9f   :  { %100 = vst [vmem:[%s208_s1] sm:$0x1] %v97_v31 }

// kernel: continuous_conv2d_forward.1
= control target key start
LH: loop header
LB: loop body
LE: loop exit
PB: predicated region body
PF: predicated region fallthrough
CT: control target
= control target key end

     0   :  { %s1089_s30 = smov 0   ;;  %s1401_s0 = inlined_call_operand.vmem [shape: f32[2,16,128], index: 0, kind: input, shape index: {}]   ;;  %s1402_s1 = inlined_call_operand.vmem [shape: f32[2,16,128], index: 1, kind: input, shape index: {}, may-alias: {1,5}]   ;;  %s1403_s2 = inlined_call_operand.vmem [shape: f32[2,16,128], index: 2, kind: input, shape index: {}, may-alias: {2,6}]   ;;  %s1404_s3 = inlined_call_operand.vmem [shape: f32[5,128,128], index: 3, kind: input, shape index: {}]   ;;  %s1405_s4 = inlined_call_operand.vmem [shape: f32[1,128], index: 4, kind: input, shape index: {}]   ;;  %s1406_s5 = inlined_call_operand.vmem [shape: f32[2,16,128], index: 5, kind: output, shape index: {0}, may-alias: {1,5}]   ;;  %s1407_s6 = inlined_call_operand.vmem [shape: f32[2,16,128], index: 6, kind: output, shape index: {1}, may-alias: {2,6}]   ;;  %s1408_s7 = inlined_call_operand.vmem [shape: f32[32,128], index: 7, kind: output, shape index: {2}]   ;;  %s1409_s8 = inlined_call_operand.vmem [shape: f32[32,128], index: 8, kind: output, shape index: {3}]   ;;  %s1410_s9 = inlined_call_operand.vmem [shape: f32[32,128], index: 9, kind: output, shape index: {4}]  }
   0x1 LB: > { %s1095_s10 = sadd.s32 4294967295, %s1036_s30   ;;  %p910_p0 = scmp.ge.s32.totalorder %s1036_s30, 1  ;;  %s1036_s30 = sphi %s1089_s30, %s20_s30  }
   0x2   : > { %p316_p1 = scmp.lt.s32.totalorder %s1036_s30, 3 }
   0x4   : > { %p317_p2 = pnand %p910_p0, %p316_p1 }
   0x5   : > { %p382_p3 = scmp.lt.s32.totalorder (!%p317_p2), %s1095_s10, 1  ;;  %s921_s27 = sshll.u32 (!%p317_p2), %s1095_s10, 1 }
   0x6   : > { %320 = sbr.rel (%p317_p2) target bundleno = 220 (0xdc), region = 40  ;;  %p408_p4 = scmp.lt.s32.totalorder (!%p317_p2), %s921_s27, 3 }
   0xb   : > { %v942_v0 = vld [vmem:[%s1404_s3 + $0xf8] sm:$0xff]  ;;  %v941_v2 = vld [vmem:[%s1404_s3 + $0xf0] sm:$0xff]  ;;  %v940_v4 = vld [vmem:[%s1404_s3 + $0xe8] sm:$0xff]  ;;  %v1038_v15 = vmov 0.0   ;;  %s383_s25 = scalar_select %p382_p3, %s1095_s10, 1 }
   0xc   : > { %v468_v1 = vld [vmem:[%s1404_s3 + $0x78] sm:$0xff]  ;;  %488 = vmatpush.msra.mxu0 %v942_v0  ;;  %v467_v3 = vld [vmem:[%s1404_s3 + $0x70] sm:$0xff]  ;;  %v466_v5 = vld [vmem:[%s1404_s3 + $0x68] sm:$0xff]  ;;  %447 = vst [vmem:[#allocation2] sm:$0x3] %v1038_v15  ;;  %s1412_s27 = smov (!%p408_p4, %s921_s27), 3 }
   0xd   : > { %511 = vmatpush.msra.mxu1 %v468_v1  ;;  %v939_v6 = vld [vmem:[%s1404_s3 + $0xe0] sm:$0xff]  ;;  %v958_v8 = vld [vmem:[%s1404_s3 + $0x178] sm:$0xff]  ;;  %v957_v9 = vld [vmem:[%s1404_s3 + $0x170] sm:$0xff]  ;;  %448 = vst [vmem:[#allocation2 + $0x12] sm:$0x3] %v1038_v15  ;;  %s1207_s23 = sshll.u32 %s383_s25, 4 }
   0xe   : > { %489 = vmatpush.msra.mxu0 %v941_v2  ;;  %v465_v7 = vld [vmem:[%s1404_s3 + $0x60] sm:$0xff]  ;;  %v974_v10 = vld [vmem:[%s1404_s3 + $0x1f8] sm:$0xff]  ;;  %553 = vmatpush.msra.mxu2 %v958_v8  ;;  %v973_v13 = vld [vmem:[%s1404_s3 + $0x1f0] sm:$0xff]  ;;  %s1231_s19 = scalar_lea.vmem %s1401_s0, %s1207_s23  ;;  %s1246_s11 = scalar_lea.vmem %s1402_s1, %s1207_s23 }
   0xf   : > { %512 = vmatpush.msra.mxu1 %v467_v3  ;;  %v938_v11 = vld [vmem:[%s1404_s3 + $0xd8] sm:$0xff]  ;;  %597 = vmatpush.msra.mxu3 %v974_v10  ;;  %v956_v14 = vld [vmem:[%s1404_s3 + $0x168] sm:$0xff]  ;;  %v937_v16 = vld [vmem:[%s1404_s3 + $0xd0] sm:$0xff]  ;;  %s1252_s13 = scalar_lea.vmem %s1403_s2, %s1207_s23  ;;  %s1294_s26 = scalar_lea.vmem %s1406_s5, %s1207_s23 }
  0x10   : > { %490 = vmatpush.msra.mxu0 %v940_v4  ;;  %v464_v12 = vld [vmem:[%s1404_s3 + $0x58] sm:$0xff]  ;;  %v463_v17 = vld [vmem:[%s1404_s3 + $0x50] sm:$0xff]  ;;  %554 = vmatpush.msra.mxu2 %v957_v9  ;;  %v972_v18 = vld [vmem:[%s1404_s3 + $0x1e8] sm:$0xff]  ;;  %s406_s24 = scalar_lea.vmem %s1407_s6, %s1207_s23  ;;  %s922_s28 = sshll.u32 %s1412_s27, 3 }
  0x11   : > { %513 = vmatpush.msra.mxu1 %v466_v5  ;;  %598 = vmatpush.msra.mxu3 %v973_v13  ;;  %v955_v19 = vld [vmem:[%s1404_s3 + $0x160] sm:$0xff]  ;;  %v936_v21 = vld [vmem:[%s1404_s3 + $0xc8] sm:$0xff]  ;;  %v954_v23 = vld [vmem:[%s1404_s3 + $0x158] sm:$0xff]  ;;  %s411_s25 = scalar_lea.vmem %s1408_s7, %s922_s28  ;;  %s417_s15 = scalar_lea.vmem %s1409_s8, %s922_s28 }
  0x12   : > { %491 = vmatpush.msra.mxu0 %v939_v6  ;;  %v971_v20 = vld [vmem:[%s1404_s3 + $0x1e0] sm:$0xff]  ;;  %v462_v22 = vld [vmem:[%s1404_s3 + $0x48] sm:$0xff]  ;;  %555 = vmatpush.msra.mxu2 %v956_v14  ;;  %v970_v24 = vld [vmem:[%s1404_s3 + $0x1d8] sm:$0xff] }
  0x13   : > { %514 = vmatpush.msra.mxu1 %v465_v7  ;;  %599 = vmatpush.msra.mxu3 %v972_v18  ;;  %v935_v25 = vld [vmem:[%s1404_s3 + $0xc0] sm:$0xff]  ;;  %v953_v27 = vld [vmem:[%s1404_s3 + $0x150] sm:$0xff]  ;;  %v934_v29 = vld [vmem:[%s1404_s3 + $0xb8] sm:$0xff] }
  0x14   : > { %492 = vmatpush.msra.mxu0 %v938_v11  ;;  %v461_v26 = vld [vmem:[%s1404_s3 + $0x40] sm:$0xff]  ;;  %556 = vmatpush.msra.mxu2 %v955_v19  ;;  %v969_v28 = vld [vmem:[%s1404_s3 + $0x1d0] sm:$0xff]  ;;  %v460_v30 = vld [vmem:[%s1404_s3 + $0x38] sm:$0xff] }
  0x15   : > { %515 = vmatpush.msra.mxu1 %v464_v12  ;;  %600 = vmatpush.msra.mxu3 %v971_v20  ;;  %v952_v31 = vld [vmem:[%s1404_s3 + $0x148] sm:$0xff]  ;;  %v933_v33 = vld [vmem:[%s1404_s3 + $0xb0] sm:$0xff]  ;;  %v951_v35 = vld [vmem:[%s1404_s3 + $0x140] sm:$0xff] }
  0x16   : > { %493 = vmatpush.msra.mxu0 %v937_v16  ;;  %557 = vmatpush.msra.mxu2 %v954_v23  ;;  %v968_v32 = vld [vmem:[%s1404_s3 + $0x1c8] sm:$0xff]  ;;  %v459_v34 = vld [vmem:[%s1404_s3 + $0x30] sm:$0xff]  ;;  %v967_v36 = vld [vmem:[%s1404_s3 + $0x1c0] sm:$0xff] }
  0x17   : > { %516 = vmatpush.msra.mxu1 %v463_v17  ;;  %601 = vmatpush.msra.mxu3 %v970_v24  ;;  %v932_v37 = vld [vmem:[%s1404_s3 + $0xa8] sm:$0xff]  ;;  %v950_v39 = vld [vmem:[%s1404_s3 + $0x138] sm:$0xff]  ;;  %v931_v41 = vld [vmem:[%s1404_s3 + $0xa0] sm:$0xff] }
  0x18   : > { %494 = vmatpush.msra.mxu0 %v936_v21  ;;  %558 = vmatpush.msra.mxu2 %v953_v27  ;;  %v458_v38 = vld [vmem:[%s1404_s3 + $0x28] sm:$0xff]  ;;  %v966_v40 = vld [vmem:[%s1404_s3 + $0x1b8] sm:$0xff]  ;;  %v457_v42 = vld [vmem:[%s1404_s3 + $0x20] sm:$0xff] }
  0x19   : > { %517 = vmatpush.msra.mxu1 %v462_v22  ;;  %602 = vmatpush.msra.mxu3 %v969_v28  ;;  %v930_v43 = vld [vmem:[%s1404_s3 + $0x98] sm:$0xff]  ;;  %v949_v45 = vld [vmem:[%s1404_s3 + $0x130] sm:$0xff]  ;;  %v948_v49 = vld [vmem:[%s1404_s3 + $0x128] sm:$0xff] }
  0x1a   : > { %495 = vmatpush.msra.mxu0 %v935_v25  ;;  %559 = vmatpush.msra.mxu2 %v952_v31  ;;  %v456_v44 = vld [vmem:[%s1404_s3 + $0x18] sm:$0xff]  ;;  %v965_v46 = vld [vmem:[%s1404_s3 + $0x1b0] sm:$0xff]  ;;  %v964_v50 = vld [vmem:[%s1404_s3 + $0x1a8] sm:$0xff] }
  0x1b   : > { %518 = vmatpush.msra.mxu1 %v461_v26  ;;  %603 = vmatpush.msra.mxu3 %v968_v32  ;;  %v929_v47 = vld [vmem:[%s1404_s3 + $0x90] sm:$0xff]  ;;  %v425_v51 = vld [vmem:[%s1231_s19] sm:$0xff]  ;;  %v928_v54 = vld [vmem:[%s1404_s3 + $0x88] sm:$0xff] }
  0x1c   : > { %496 = vmatpush.msra.mxu0 %v934_v29  ;;  %560 = vmatpush.msra.mxu2 %v951_v35  ;;  %v455_v48 = vld [vmem:[%s1404_s3 + $0x10] sm:$0xff]  ;;  %v429_v52 = vld [vmem:[%s1246_s11] sm:$0xff]  ;;  %v454_v55 = vld [vmem:[%s1404_s3 + $0x8] sm:$0xff]  ;;  %v427_v57 = vmul.f32 10.0, %v425_v51 }
  0x1d   : > { %519 = vmatpush.msra.mxu1 %v460_v30  ;;  %604 = vmatpush.msra.mxu3 %v967_v36  ;;  %v435_v53 = vld [vmem:[%s1252_s13] sm:$0xff]  ;;  %v431_v58 = vmul.f32 0.9, %v429_v52  ;;  %v426_v60 = vld [vmem:[%s1231_s19 + $0x8] sm:$0xff]  ;;  %v946_v3 = vld [vmem:[%s1404_s3 + $0x118] sm:$0xff] }
  0x1e   : > { %497 = vmatpush.msra.mxu0 %v933_v33  ;;  %561 = vmatpush.msra.mxu2 %v950_v39  ;;  %v947_v56 = vld [vmem:[%s1404_s3 + $0x120] sm:$0xff]  ;;  %v430_v61 = vld [vmem:[%s1246_s11 + $0x8] sm:$0xff]  ;;  %v437_v63 = vmul.f32 0.95, %v435_v53  ;;  %v428_v0 = vmul.f32 10.0, %v426_v60  ;;  %v962_v4 = vld [vmem:[%s1404_s3 + $0x198] sm:$0xff]  ;;  %s423_s11 = scalar_lea.vmem %s1410_s9, %s922_s28 }
  0x1f   : > { %520 = vmatpush.msra.mxu1 %v459_v34  ;;  %605 = vmatpush.msra.mxu3 %v966_v40  ;;  %v963_v59 = vld [vmem:[%s1404_s3 + $0x1a0] sm:$0xff]  ;;  %v433_v62 = vadd.f32 %v431_v58, %v427_v57  ;;  %v432_v1 = vmul.f32 0.9, %v430_v61  ;;  %v436_v2 = vld [vmem:[%s1252_s13 + $0x8] sm:$0xff]  ;;  %v990_v10 = vld [vmem:[%s1404_s3 + $0x278] sm:$0xff] }
  0x20   : > { %498 = vmatpush.msra.mxu0 %v932_v37  ;;  %562 = vmatpush.msra.mxu2 %v949_v45  ;;  %v927_v5 = vld [vmem:[%s1404_s3 + $0x80] sm:$0xff]  ;;  %v438_v9 = vmul.f32 0.95, %v436_v2  ;;  %v945_v11 = vld [vmem:[%s1404_s3 + $0x110] sm:$0xff]  ;;  %v944_v17 = vld [vmem:[%s1404_s3 + $0x108] sm:$0xff] }
  0x21   : > { %521 = vmatpush.msra.mxu1 %v458_v38  ;;  %606 = vmatpush.msra.mxu3 %v965_v46  ;;  %v453_v6 = vld [vmem:[%s1404_s3] sm:$0xff]  ;;  %v439_v7 = vmul.f32 20.0, %v433_v62  ;;  %v434_v8 = vadd.f32 %v432_v1, %v428_v0  ;;  %443 = vst [vmem:[%s1294_s26] sm:$0xff] %v433_v62  ;;  %v961_v12 = vld [vmem:[%s1404_s3 + $0x190] sm:$0xff]  ;;  %v960_v18 = vld [vmem:[%s1404_s3 + $0x188] sm:$0xff] }
  0x22   : > { %499 = vmatpush.msra.mxu0 %v931_v41  ;;  %563 = vmatpush.msra.mxu2 %v948_v49  ;;  %v989_v16 = vld [vmem:[%s1404_s3 + $0x270] sm:$0xff]  ;;  %v988_v20 = vld [vmem:[%s1404_s3 + $0x268] sm:$0xff]  ;;  %v943_v21 = vld [vmem:[%s1404_s3 + $0x100] sm:$0xff] }
  0x23   : > { %522 = vmatpush.msra.mxu1 %v457_v42  ;;  %607 = vmatpush.msra.mxu3 %v964_v50  ;;  %v441_v13 = vadd.f32 %v439_v7, %v437_v63  ;;  %v440_v14 = vmul.f32 20.0, %v434_v8  ;;  %444 = vst [vmem:[%s1294_s26 + $0x8] sm:$0xff] %v434_v8  ;;  %v959_v22 = vld [vmem:[%s1404_s3 + $0x180] sm:$0xff]  ;;  %v986_v24 = vld [vmem:[%s1404_s3 + $0x258] sm:$0xff]  ;;  %v985_v25 = vld [vmem:[%s1404_s3 + $0x250] sm:$0xff] }
  0x24   : > { %500 = vmatpush.msra.mxu0 %v930_v43  ;;  %564 = vmatpush.msra.mxu2 %v947_v56  ;;  %v987_v23 = vld [vmem:[%s1404_s3 + $0x260] sm:$0xff]  ;;  %v984_v28 = vld [vmem:[%s1404_s3 + $0x248] sm:$0xff]  ;;  %v982_v31 = vld [vmem:[%s1404_s3 + $0x238] sm:$0xff] }
  0x25   : > { %523 = vmatpush.msra.mxu1 %v456_v44  ;;  %608 = vmatpush.msra.mxu3 %v963_v59  ;;  %449 = vst [vmem:[#allocation2 + $0x2] sm:$0xff] %v441_v13  ;;  %v442_v19 = vadd.f32 %v440_v14, %v438_v9  ;;  %v983_v30 = vld [vmem:[%s1404_s3 + $0x240] sm:$0xff]  ;;  %v981_v34 = vld [vmem:[%s1404_s3 + $0x230] sm:$0xff]  ;;  %v980_v36 = vld [vmem:[%s1404_s3 + $0x228] sm:$0xff] }
  0x26   : > { %501 = vmatpush.msra.mxu0 %v929_v47  ;;  %565 = vmatpush.msra.mxu2 %v946_v3  ;;  %445 = vst [vmem:[%s406_s24] sm:$0xff] %v441_v13  ;;  %v979_v37 = vld [vmem:[%s1404_s3 + $0x220] sm:$0xff]  ;;  %v978_v38 = vld [vmem:[%s1404_s3 + $0x218] sm:$0xff]  ;;  %v977_v39 = vld [vmem:[%s1404_s3 + $0x210] sm:$0xff] }
  0x27   : > { %524 = vmatpush.msra.mxu1 %v455_v48  ;;  %609 = vmatpush.msra.mxu3 %v962_v4  ;;  %446 = vst [vmem:[%s406_s24 + $0x8] sm:$0xff] %v442_v19  ;;  %v976_v40 = vld [vmem:[%s1404_s3 + $0x208] sm:$0xff]  ;;  %v975_v41 = vld [vmem:[%s1404_s3 + $0x200] sm:$0xff] }
  0x28   : > { %502 = vmatpush.msra.mxu0 %v928_v54  ;;  %566 = vmatpush.msra.mxu2 %v945_v11  ;;  %450 = vst [vmem:[#allocation2 + $0xa] sm:$0xff] %v442_v19  ;;  %v1025_v58 = vld [vmem:[%s1405_s4] ss:$0 sm:$0xff] }
  0x29   : > { %525 = vmatpush.msra.mxu1 %v454_v55  ;;  %610 = vmatpush.msra.mxu3 %v961_v12 }
  0x2a   : > { %503 = vmatpush.msra.mxu0 %v927_v5  ;;  %567 = vmatpush.msra.mxu2 %v944_v17 }
  0x2b   : > { %526 = vmatpush.msra.mxu1 %v453_v6  ;;  %611 = vmatpush.msra.mxu3 %v960_v18 }
  0x2c   : > { %641 = vmatpush.msrb.mxu0 %v990_v10  ;;  %568 = vmatpush.msra.mxu2 %v943_v21  ;;  %v469_v26 = vld [vmem:[#allocation2 + $0x1] sm:$0xff] }
  0x2d   : > { %1000 = vmatpush.msrb.mxu1 %v990_v10  ;;  %612 = vmatpush.msra.mxu3 %v959_v22  ;;  %v451_v27 = vld [vmem:[#allocation2] sm:$0xff] }
  0x2e   : > { %642 = vmatpush.msrb.mxu0 %v989_v16  ;;  %569 = vmatmul.f32.vlgmr.msra.gmra.mxu2 %v441_v13 }
  0x2f   : > { %1001 = vmatpush.msrb.mxu1 %v989_v16  ;;  %504 = vmatmul.f32.vlgmr.msra.gmra.mxu0 %v469_v26  ;;  %v578_v29 = vld [vmem:[#allocation2 + $0x3] sm:$0xff]  ;;  %v579_v35 = vld [vmem:[#allocation2 + $0xb] sm:$0xff] }
  0x30   : > { %643 = vmatpush.msrb.mxu0 %v988_v20  ;;  %527 = vmatmul.f32.vlgmr.msra.gmra.mxu1 %v451_v27  ;;  %v470_v32 = vld [vmem:[#allocation2 + $0x9] sm:$0xff] }
  0x31   : > { %1002 = vmatpush.msrb.mxu1 %v988_v20  ;;  %613 = vmatmul.f32.vlgmr.msra.gmra.mxu3 %v578_v29  ;;  %v452_v33 = vld [vmem:[#allocation2 + $0x8] sm:$0xff] }
  0x32   : > { %644 = vmatpush.msrb.mxu0 %v987_v23  ;;  %v622_v42 = vld [vmem:[#allocation2 + $0x4] sm:$0xff]  ;;  %v623_v43 = vld [vmem:[#allocation2 + $0xc] sm:$0xff] }
  0x33   : > { %1003 = vmatpush.msrb.mxu1 %v987_v23 }
  0x34   : > { %645 = vmatpush.msrb.mxu0 %v986_v24 }
  0x35   : > { %1004 = vmatpush.msrb.mxu1 %v986_v24 }
  0x36   : > { %646 = vmatpush.msrb.mxu0 %v985_v25  ;;  %572 = vmatmul.f32.gmra.mxu2 %v442_v19 }
  0x37   : > { %1005 = vmatpush.msrb.mxu1 %v985_v25  ;;  %507 = vmatmul.f32.gmra.mxu0 %v470_v32 }
  0x38   : > { %647 = vmatpush.msrb.mxu0 %v984_v28  ;;  %530 = vmatmul.f32.gmra.mxu1 %v452_v33 }
  0x39   : > { %1006 = vmatpush.msrb.mxu1 %v984_v28  ;;  %616 = vmatmul.f32.gmra.mxu3 %v579_v35 }
  0x3a   : > { %648 = vmatpush.msrb.mxu0 %v983_v30 }
  0x3b   : > { %1007 = vmatpush.msrb.mxu1 %v983_v30 }
  0x3c   : > { %649 = vmatpush.msrb.mxu0 %v982_v31 }
  0x3d   : > { %1008 = vmatpush.msrb.mxu1 %v982_v31 }
  0x3e   : > { %650 = vmatpush.msrb.mxu0 %v981_v34 }
  0x3f   : > { %1009 = vmatpush.msrb.mxu1 %v981_v34 }
  0x40   : > { %651 = vmatpush.msrb.mxu0 %v980_v36 }
  0x41   : > { %1010 = vmatpush.msrb.mxu1 %v980_v36 }
  0x42   : > { %652 = vmatpush.msrb.mxu0 %v979_v37 }
  0x43   : > { %1011 = vmatpush.msrb.mxu1 %v979_v37 }
  0x44   : > { %653 = vmatpush.msrb.mxu0 %v978_v38 }
  0x45   : > { %1012 = vmatpush.msrb.mxu1 %v978_v38 }
  0x46   : > { %654 = vmatpush.msrb.mxu0 %v977_v39 }
  0x47   : > { %1013 = vmatpush.msrb.mxu1 %v977_v39 }
  0x48   : > { %655 = vmatpush.msrb.mxu0 %v976_v40 }
  0x49   : > { %1014 = vmatpush.msrb.mxu1 %v976_v40 }
  0x4a   : > { %656 = vmatpush.msrb.mxu0 %v975_v41 }
  0x4b   : > { %1015 = vmatpush.msrb.mxu1 %v975_v41  ;;  %657 = vmatmul.f32.vlgmr.msrb.gmra.mxu0 %v622_v42 }
  0x4c   : > { %660 = vmatmul.f32.vlgmr.msrb.gmra.mxu1 %v623_v43 }
  0xac   : > { %v505_v44 = vpop.f32.mrf.mxu0 }
  0xad   : > { %v528_v45 = vpop.f32.mrf.mxu1 }
  0xae   : > { %v529_v50 = vadd.f32 %v528_v45, %v505_v44 }
  0xb1   : > { %v570_v46 = vpop.f32.mrf.mxu2 }
  0xb2   : > { %v576_v53 = vadd.f32 %v570_v46, %v529_v50 }
  0xb4   : > { %v614_v47 = vpop.f32.mrf.mxu3  ;;  %v508_v48 = vpop.f32.mrf.mxu0 }
  0xb5   : > { %v531_v49 = vpop.f32.mrf.mxu1  ;;  %v620_v56 = vadd.f32 %v614_v47, %v576_v53 }
  0xb6   : > { %v532_v51 = vadd.f32 %v531_v49, %v508_v48 }
  0xb9   : > { %v573_v52 = vpop.f32.mrf.mxu2 }
  0xba   : > { %v577_v54 = vadd.f32 %v573_v52, %v532_v51 }
  0xbc   : > { %v617_v55 = vpop.f32.mrf.mxu3 }
  0xbd   : > { %v621_v57 = vadd.f32 %v617_v55, %v577_v54 }
  0xc8   : > { %v658_v59 = vpop.f32.mrf.mxu0 }
  0xc9   : > { %v661_v60 = vpop.f32.mrf.mxu1  ;;  %v664_v61 = vadd.f32 %v658_v59, %v620_v56 }
  0xca   : > { %v665_v62 = vadd.f32 %v661_v60, %v621_v57 }
  0xcb   : > { %v670_v63 = vadd.f32 %v1025_v58, %v664_v61 }
  0xcc   : > { %v671_v0 = vadd.f32 %v1025_v58, %v665_v62 }
  0xcd   : > { %672 = vst [vmem:[%s423_s11] sm:$0xff] %v670_v63  ;;  %v674_v1 = vmul.f32 0.5, %v670_v63  ;;  %vm684_vm0 = vcmp.gt.f32.partialorder %v670_v63, 0.0 }
  0xce   : > { %v675_v2 = vmul.f32 0.5, %v671_v0  ;;  %vm685_vm1 = vcmp.gt.f32.partialorder %v671_v0, 0.0  ;;  %v991_v3 = vsel %vm684_vm0, 1.0, %v1038_v15  ;;  %673 = vst [vmem:[%s423_s11 + $0x8] sm:$0xff] %v671_v0 }
  0xcf   : > { %v992_v4 = vsel %vm685_vm1, 1.0, %v1038_v15  ;;  %1026 = vtanh.f32 %v674_v1  ;;  %690 = vst [vmem:[%s411_s25] sm:$0xff] %v991_v3 }
  0xd0   : > { %1028 = vtanh.f32 %v675_v2  ;;  %691 = vst [vmem:[%s411_s25 + $0x8] sm:$0xff] %v992_v4 }
  0xd5   : > { %v1027_v5 = vpop.eup %1026 }
  0xd6   : > { %v1029_v6 = vpop.eup %1028  ;;  %v678_v7 = vmul.f32 0.5, %v1027_v5 }
  0xd7   : > { %v679_v8 = vmul.f32 0.5, %v1029_v6 }
  0xd8   : > { %v680_v9 = vadd.f32 0.5, %v678_v7 }
  0xd9   : > { %v681_v10 = vadd.f32 0.5, %v679_v8 }
  0xda   : > { %682 = vst [vmem:[%s417_s15] sm:$0xff] %v680_v9 }
  0xdb   : > { %683 = vst [vmem:[%s417_s15 + $0x8] sm:$0xff] %v681_v10 }
  0xdc PF: > { %s20_s30 = sadd.s32 1, %s1036_s30  }
  0xdd   : > { %p17_p5 = scmp.ge.s32.totalorder %s20_s30, 4  }
  0xdf   :  { %19 = sbr.rel (!%p17_p5) target bundleno = 1 (0x1), region = 128 }

</bundles_post_ra>
